<compile_context>
chip_gen: v7x
topology: tpu7x:2x2x1
jax: 0.10.0
libtpu: 0.0.40
codegen_flags: <defaults>
</compile_context>

<pallas_src>
import functools

import numpy as np
import jax
import jax.numpy as jnp
from jax.experimental import pallas as pl
from jax.experimental.pallas import tpu as pltpu

EPS = 1e-5
N_BATCH = 2
S = 896                       # per-sample padded frame (28*28 -> 896 = 7*128 lanes)
NS = N_BATCH * S              # 1792 lanes, batch stacked along the lane axis

# Packed weight-buffer row offsets (all multiples of 8).
_W1, _W2, _W3, _W4, _W5, _W6, _W7, _W8 = 0, 8, 24, 40, 56, 72, 96, 120
_WBUF_ROWS, _WBUF_COLS = 136, 144
_BN_ROW, _BN_COL = 96, 16     # BN gammas/betas live in the unused columns 16..25


# --------------------------------------------------------------------------------------
# The single fused kernel
# --------------------------------------------------------------------------------------

def _model7_kernel(x_ref, aux_ref, w_ref, out_ref, *, roll_numpy):
    """Whole Model_7 forward on VMEM-resident data.

    Layout: activations are [C_pad, NS] f32, channels on sublanes, batch-stacked
    zero-padded spatial frame on lanes (column n*S + 28*h + w).
    """

    def shift_back(v, off):
        # v'[:, j] = v[:, j + off]; wrap-around only ever lands on invalid columns.
        if off == 0:
            return v
        amount = (NS - off) if roll_numpy else off
        return pltpu.roll(v, amount, axis=1)

    def conv3x3(v, w_row, cin_p, cout_p, step):
        # 9 lane-rolled taps -> 8-aligned sublane concat -> ONE MXU matmul (K=9*cin_p).
        taps = [shift_back(v, step * (28 * di + dj))
                for di in range(3) for dj in range(3)]
        patch = jnp.concatenate(taps, axis=0)                        # [9*cin_p, NS]
        w = w_ref[w_row:w_row + cout_p, 0:9 * cin_p]                 # [cout_p, 9*cin_p]
        return jnp.dot(w, patch, preferred_element_type=jnp.float32)  # [cout_p, NS]

    def relu_bn(v, mask_row, bn_col, cpad, count):
        # ReLU then BatchNorm2d with training-mode batch statistics (biased var),
        # taken over the `count` valid positions selected by the 0/1 mask row.
        v = jnp.maximum(v, 0.0)
        m = aux_ref[mask_row:mask_row + 1, :]                        # [1, NS]
        vm = v * m
        s = jnp.sum(vm, axis=1, keepdims=True)                       # [cpad, 1]
        ss = jnp.sum(vm * v, axis=1, keepdims=True)
        inv = 1.0 / count
        mean = s * inv
        var = jnp.maximum(ss * inv - mean * mean, 0.0)
        gamma = w_ref[_BN_ROW:_BN_ROW + cpad, _BN_COL + bn_col:_BN_COL + bn_col + 1]
        beta = w_ref[_BN_ROW:_BN_ROW + cpad, _BN_COL + bn_col + 1:_BN_COL + bn_col + 2]
        scale = gamma * jax.lax.rsqrt(var + EPS)
        shift = beta - mean * scale
        return v * scale + shift

    y = x_ref[...]                                                   # [8, NS], row 0 = image
    # convblock1: 1 -> 8 channels, 26x26 valid
    y = relu_bn(conv3x3(y, _W1, 8, 8, 1), 0, 0, 8, 2.0 * 26 * 26)
    # convblock2: 8 -> 14 channels, 24x24 valid
    y = relu_bn(conv3x3(y, _W2, 8, 16, 1), 1, 2, 16, 2.0 * 24 * 24)
    # convblock3: 1x1 conv, 14 -> 10 channels (no ReLU / BN)
    y = jnp.dot(w_ref[_W3:_W3 + 16, 0:16], y, preferred_element_type=jnp.float32)
    # pool1: MaxPool2d(2,2); pooled 12x12 map lives on the stride-2 grid of the frame
    y = jnp.maximum(y, shift_back(y, 28))
    y = jnp.maximum(y, shift_back(y, 1))
    # convblock4: 10 -> 14 channels, 10x10 valid (stride-2 taps)
    y = relu_bn(conv3x3(y, _W4, 16, 16, 2), 2, 4, 16, 2.0 * 10 * 10)
    # convblock5: 14 -> 16 channels, 8x8 valid
    y = relu_bn(conv3x3(y, _W5, 16, 16, 2), 3, 6, 16, 2.0 * 8 * 8)
    # convblock6: 16 -> 20 channels, 6x6 valid
    y = relu_bn(conv3x3(y, _W6, 16, 24, 2), 4, 8, 24, 2.0 * 6 * 6)

    # GAP (AvgPool2d(6)): per-sample 1/36 averaging rows (valid 6x6 columns only).
    g = aux_ref[5:7, :]                                              # [2, NS]
    feats = jax.lax.dot_general(g, y, (((1,), (1,)), ((), ())),
                                preferred_element_type=jnp.float32)   # [2, 24]
    # 1x1 head convs (dense at 1x1 spatial) + log_softmax
    h = jnp.dot(feats, w_ref[_W7:_W7 + 24, 0:16], preferred_element_type=jnp.float32)
    h = jnp.dot(h, w_ref[_W8:_W8 + 16, 0:10], preferred_element_type=jnp.float32)
    z = h - jnp.max(h, axis=-1, keepdims=True)
    out_ref[...] = z - jnp.log(jnp.sum(jnp.exp(z), axis=-1, keepdims=True))


# --------------------------------------------------------------------------------------
# pltpu.roll sign-convention probe (run once; guarantees tap shifts read x[:, j+off])
# --------------------------------------------------------------------------------------

_ROLL_NUMPY = None


def _roll_is_numpy_convention():
    global _ROLL_NUMPY
    if _ROLL_NUMPY is None:
        def probe(x_ref, o_ref):
            o_ref[...] = pltpu.roll(x_ref[...], 1, axis=1)

        x = jnp.broadcast_to(jnp.arange(128, dtype=jnp.float32), (8, 128))
        out = pl.pallas_call(
            probe,
            out_shape=jax.ShapeDtypeStruct((8, 128), jnp.float32),
            in_specs=[pl.BlockSpec(memory_space=pltpu.MemorySpace.VMEM)],
            out_specs=pl.BlockSpec(memory_space=pltpu.MemorySpace.VMEM),
        )(x)
        v = float(jax.device_get(out)[0, 0])
        if v == 127.0:
            _ROLL_NUMPY = True      # np.roll semantics: shift moves data to higher idx
        elif v == 1.0:
            _ROLL_NUMPY = False
        else:
            raise RuntimeError(f"unexpected pltpu.roll probe result: {v}")
    return _ROLL_NUMPY


# --------------------------------------------------------------------------------------
# Wrapper: one-time parameter packing + single pallas_call per forward
# --------------------------------------------------------------------------------------

def pack_params(params):
    """One-time host-side re-layout into the 2 constant kernel inputs."""
    p = {k: np.asarray(v, dtype=np.float32) for k, v in params.items()}

    wbuf = np.zeros((_WBUF_ROWS, _WBUF_COLS), np.float32)

    def put3x3(row, cin_p, w):                       # w: [cout, cin, 3, 3]
        cout, cin = w.shape[0], w.shape[1]
        for di in range(3):
            for dj in range(3):
                k = 3 * di + dj
                wbuf[row:row + cout, k * cin_p:k * cin_p + cin] = w[:, :, di, dj]

    put3x3(_W1, 8, p["w1"])
    put3x3(_W2, 8, p["w2"])
    wbuf[_W3:_W3 + 10, 0:14] = p["w3"].reshape(10, 14)
    put3x3(_W4, 16, p["w4"])
    put3x3(_W5, 16, p["w5"])
    put3x3(_W6, 16, p["w6"])
    # head 1x1 convs are used as feats @ W, so store transposed ([cin, cout])
    wbuf[_W7:_W7 + 20, 0:16] = p["w7"].reshape(16, 20).T
    wbuf[_W8:_W8 + 16, 0:10] = p["w8"].reshape(10, 16).T
    # BN gammas/betas packed as columns into unused wbuf columns
    for i, (g, b) in enumerate([("g1", "b1"), ("g2", "b2"), ("g4", "b4"),
                                ("g5", "b5"), ("g6", "b6")]):
        wbuf[_BN_ROW:_BN_ROW + p[g].shape[0], _BN_COL + 2 * i] = p[g]
        wbuf[_BN_ROW:_BN_ROW + p[b].shape[0], _BN_COL + 2 * i + 1] = p[b]

    aux = np.zeros((8, NS), np.float32)

    def valid_cols(v, step):
        return np.asarray([n * S + step * (28 * h + w)
                           for n in range(N_BATCH)
                           for h in range(v) for w in range(v)], np.int64)

    aux[0, valid_cols(26, 1)] = 1.0          # BN1 mask
    aux[1, valid_cols(24, 1)] = 1.0          # BN2 mask
    aux[2, valid_cols(10, 2)] = 1.0          # BN4 mask
    aux[3, valid_cols(8, 2)] = 1.0           # BN5 mask
    aux[4, valid_cols(6, 2)] = 1.0           # BN6 mask
    for n in range(N_BATCH):                 # GAP (AvgPool2d(6)) averaging rows
        for h in range(6):
            for w in range(6):
                aux[5 + n, n * S + 2 * (28 * h + w)] = 1.0 / 36.0

    return {"wbuf": jnp.asarray(wbuf), "aux": jnp.asarray(aux)}


@functools.lru_cache(maxsize=2)
def _get_fwd(roll_numpy):
    kernel = functools.partial(_model7_kernel, roll_numpy=roll_numpy)

    @jax.jit
    def fwd(x_nchw, aux, wbuf):
        x = x_nchw.astype(jnp.float32).reshape(N_BATCH, 28 * 28)
        x = jnp.pad(x, ((0, 0), (0, S - 28 * 28))).reshape(1, NS)    # lane-padded frame
        x = jnp.pad(x, ((0, 7), (0, 0)))                             # [8, NS] channel pad
        return pl.pallas_call(
            kernel,
            out_shape=jax.ShapeDtypeStruct((N_BATCH, 10), jnp.float32),
            in_specs=[pl.BlockSpec(memory_space=pltpu.MemorySpace.VMEM)] * 3,
            out_specs=pl.BlockSpec(memory_space=pltpu.MemorySpace.VMEM),
        )(x, aux, wbuf)

    return fwd


def model7_forward(packed, x_nchw):
    assert x_nchw.shape == (N_BATCH, 1, 28, 28), x_nchw.shape
    fwd = _get_fwd(_roll_is_numpy_convention())
    return fwd(x_nchw, packed["aux"], packed["wbuf"])


# --------------------------------------------------------------------------------------
# Deterministic synthetic parameters + pure-JAX reference for a self-check
# --------------------------------------------------------------------------------------

def init_params(key):
    ks = list(jax.random.split(key, 24))

    def conv_w(k, cout, cin, kh, kw):
        fan_in = cin * kh * kw
        return jax.random.normal(k, (cout, cin, kh, kw), jnp.float32) / jnp.sqrt(float(fan_in))

    def bn(kg, kb, c):
        g = 1.0 + 0.1 * jax.random.normal(kg, (c,), jnp.float32)
        b = 0.1 * jax.random.normal(kb, (c,), jnp.float32)
        return g, b

    p = {}
    p["w1"] = conv_w(ks[0], 8, 1, 3, 3);    p["g1"], p["b1"] = bn(ks[1], ks[2], 8)
    p["w2"] = conv_w(ks[3], 14, 8, 3, 3);   p["g2"], p["b2"] = bn(ks[4], ks[5], 14)
    p["w3"] = conv_w(ks[6], 10, 14, 1, 1)
    p["w4"] = conv_w(ks[7], 14, 10, 3, 3);  p["g4"], p["b4"] = bn(ks[8], ks[9], 14)
    p["w5"] = conv_w(ks[10], 16, 14, 3, 3); p["g5"], p["b5"] = bn(ks[11], ks[12], 16)
    p["w6"] = conv_w(ks[13], 20, 16, 3, 3); p["g6"], p["b6"] = bn(ks[14], ks[15], 20)
    p["w7"] = conv_w(ks[16], 16, 20, 1, 1)
    p["w8"] = conv_w(ks[17], 10, 16, 1, 1)
    return p


def _reference_forward(params, x_nchw):
    """Pure-JAX (XLA) reference with identical semantics."""
    x = jnp.transpose(x_nchw, (0, 2, 3, 1)).astype(jnp.float32)

    def conv(v, w):
        return jax.lax.conv_general_dilated(
            v, jnp.transpose(w, (2, 3, 1, 0)), window_strides=(1, 1),
            padding="VALID", dimension_numbers=("NHWC", "HWIO", "NHWC"),
            precision=jax.lax.Precision.HIGHEST)

    def relu_bn(v, g, b):
        v = jax.nn.relu(v)
        mean = jnp.mean(v, axis=(0, 1, 2))
        var = jnp.mean((v - mean) ** 2, axis=(0, 1, 2))
        return (v - mean) * jax.lax.rsqrt(var + EPS) * g + b

    x = relu_bn(conv(x, params["w1"]), params["g1"], params["b1"])
    x = relu_bn(conv(x, params["w2"]), params["g2"], params["b2"])
    x = conv(x, params["w3"])
    x = jax.lax.reduce_window(x, -jnp.inf, jax.lax.max,
                              (1, 2, 2, 1), (1, 2, 2, 1), "VALID")
    x = relu_bn(conv(x, params["w4"]), params["g4"], params["b4"])
    x = relu_bn(conv(x, params["w5"]), params["g5"], params["b5"])
    x = relu_bn(conv(x, params["w6"]), params["g6"], params["b6"])
    x = jnp.mean(x, axis=(1, 2), keepdims=True)
    x = conv(x, params["w7"])
    x = conv(x, params["w8"])
    logits = x.reshape(-1, 10)
    return jax.nn.log_softmax(logits, axis=-1)


if __name__ == "__main__":
    key = jax.random.PRNGKey(0)
    pkey, xkey = jax.random.split(key)
    params = init_params(pkey)
    # Architecture implies 28x28 single-channel inputs (MNIST-like); batch = 2.
    x = jax.random.normal(xkey, (2, 1, 28, 28), jnp.float32)

    packed = pack_params(params)            # one-time prep, hoisted off the per-call path
    out = jax.block_until_ready(model7_forward(packed, x))
    assert out.shape == (2, 10), out.shape

    # log_softmax sanity: rows exponentiate-sum to 1
    row_sums = jnp.sum(jnp.exp(out), axis=-1)
    assert bool(jnp.all(jnp.abs(row_sums - 1.0) < 1e-3)), row_sums

    # numerical self-check against a pure-XLA reference
    ref = jax.block_until_ready(jax.jit(_reference_forward)(params, x))
    err = float(jnp.max(jnp.abs(out - ref)))
    assert err < 5e-2, err

    print("KERNEL_OK")
</pallas_src>

<mosaic_0001>
module attributes {stable_mosaic.version = 11 : i64} {
  func.func @probe(%arg0: memref<8x128xf32, #tpu.memory_space<vmem>>, %arg1: memref<8x128xf32, #tpu.memory_space<vmem>>) attributes {dimension_semantics = [], scalar_prefetch = 0 : i64, scratch_operands = 0 : i64, tpu.core_type = #tpu.core_type<tc>} {
    %c0 = arith.constant 0 : index
    %c0_0 = arith.constant 0 : index
    %0 = vector.load %arg0[%c0, %c0_0] : memref<8x128xf32, #tpu.memory_space<vmem>>, vector<8x128xf32>
    %c1_i32 = arith.constant 1 : i32
    %1 = tpu.dynamic_rotate %0 by %c1_i32 dim 1 : vector<8x128xf32>, i32 -> vector<8x128xf32>
    %c0_1 = arith.constant 0 : index
    %c0_2 = arith.constant 0 : index
    %2 = vector.load %arg1[%c0_1, %c0_2] : memref<8x128xf32, #tpu.memory_space<vmem>>, vector<8x128xf32>
    tpu.vector_store %arg1[%c0_1, %c0_2], %1 {strides = array<i32>} : memref<8x128xf32, #tpu.memory_space<vmem>>, vector<8x128xf32>,
    return
  }
}

</mosaic_0001>

<bundles_post_ra>
// kernel: tpu_custom_call.1
= control target key start
LH: loop header
LB: loop body
LE: loop exit
PB: predicated region body
PF: predicated region fallthrough
CT: control target
= control target key end

     0   :  { %6 = vsyncpa [#allocation3], 0  ;;  %s128_s0 = inlined_call_operand.hbm [shape: f32[8,128], index: 0, kind: input, shape index: {}]   ;;  %s129_s1 = inlined_call_operand.hbm [shape: f32[8,128], index: 1, kind: output, shape index: {}]  }
   0x1   :  { %7 = vsyncpa [#allocation4], 0  ;;  %s91_s6 = smov [#allocation2]   ;;  %s43_s10 = scalar_lea.hbm %s128_s0, 128 }
   0x2   :  { %s14_s7 = sshll.u32 %s91_s6, 4  ;;  %p44_p0 = scmp.ne.s32.totalorder %s128_s0, %s43_s10  ;;  %s15_s7 = int_to_ptr.vmem [resolvable:$true] %s14_s7 }
   0x3   :  { %p47_p1 = scmp.lt.u32.totalorder %s43_s10, %s128_s0 }
   0x5   :  { %p49_p2 = pnand %p47_p1, %p44_p0 }
   0x7   :  { %52 = shalt.err (!%p49_p2)
}
   0x8   :  { %s53_s15 = scalar_lea.vmem %s15_s7, 128  ;;  %p58_p4 = scmp.lt.s32.totalorder %s15_s7, %s15_s7 }
   0x9   :  { %p54_p3 = scmp.ne.s32.totalorder %s15_s7, %s53_s15  ;;  %p59_p5 = scmp.lt.s32.totalorder %s53_s15, %s53_s15 }
   0xb   :  { %p60_p6 = por %p59_p5, %p58_p4 }
   0xd   :  { %p61_p7 = pnand %p60_p6, %p54_p3 }
   0xf   :  { %64 = shalt.err (!%p61_p7)
}
  0x10   :  { %17 = dma.hbm_to_vmem [thread:$0]  %s128_s0, 128, %s15_s7, [#allocation3]  }
  0x11   :  { %87 = dma.done.wait [#allocation3], 128  }
  0x12   :  { %88 = vsyncadd [#allocation3], 4294967168  ;;  %v21_v0 = vld [vmem:[#allocation2] sm:$0xff]  ;;  %s92_s18 = smov 1   ;;  %s93_s19 = smov [#allocation5]  }
  0x13   :  { %22 = vrot.lane.b32.xlu0 %v21_v0, %s92_s18  ;;  %s31_s20 = sshll.u32 %s93_s19, 4  ;;  %s32_s20 = int_to_ptr.vmem [resolvable:$true] %s31_s20 }
  0x14   :  { %s65_s21 = scalar_lea.vmem %s32_s20, 128  ;;  %p70_p9 = scmp.lt.s32.totalorder %s32_s20, %s32_s20 }
  0x15   :  { %p66_p8 = scmp.ne.s32.totalorder %s32_s20, %s65_s21  ;;  %p71_p10 = scmp.lt.s32.totalorder %s65_s21, %s65_s21 }
  0x17   :  { %p72_p11 = por %p71_p10, %p70_p9 }
  0x19   :  { %p73_p12 = pnand %p72_p11, %p66_p8 }
  0x85   :  { %v23_v1 = vpop.permute.xlu0 %22 }
  0x86   :  { %24 = vst [vmem:[#allocation5] sm:$0xff] %v23_v1 }
  0x87   :  { %76 = shalt.err (!%p73_p12)
}
  0x88   :  { %s77_s0 = scalar_lea.hbm %s129_s1, 128 }
  0x89   :  { %p78_p13 = scmp.ne.s32.totalorder %s129_s1, %s77_s0  ;;  %p81_p0 = scmp.lt.u32.totalorder %s77_s0, %s129_s1 }
  0x8b   :  { %p83_p1 = pnand %p81_p0, %p78_p13 }
  0x8d   :  { %86 = shalt.err (!%p83_p1)
}
  0x8e   :  { %34 = dma.vmem_to_hbm [thread:$0]  %s32_s20, 128, %s129_s1, [#allocation4]  }
  0x8f   :  { %89 = dma.done.wait [#allocation4], 128  }
  0x90   :  { %90 = vsyncadd [#allocation4], 4294967168 }
  0x91   :  { %38 = vsyncpa [#allocation3], 1 }
  0x92   :  { %39 = vsyncpa [#allocation4], 1 }

</bundles_post_ra>
